<compile_context>
chip_gen: v5e
topology: v5e:2x2
jax: 0.10.0
libtpu: 0.0.40
codegen_flags: <defaults>
</compile_context>

<pallas_src>
import math

import jax
import jax.numpy as jnp
from jax.experimental import pallas as pl
from jax.experimental.pallas import tpu as pltpu


def _round_up(n, m):
    return ((n + m - 1) // m) * m


def _hash_u32(x):
    """Murmur3-style 32-bit finalizer: cheap VPU int ops, good avalanche."""
    x = x ^ (x >> 16)
    x = x * jnp.uint32(0x7FEB352D)
    x = x ^ (x >> 15)
    x = x * jnp.uint32(0x846CA68B)
    x = x ^ (x >> 16)
    return x


def _make_prenet_kernel(num_layers, dropout_p, apply_dropout, mxu_dtype, out_scale):
    """Kernel applying `num_layers` fused (Linear -> ReLU -> Dropout) steps to one
    row tile.  Layers are chained in-kernel (no HBM round-trips for activations)."""
    # Drop an element iff hash(counter) < threshold (threshold = p * 2^32).
    threshold = min(int(round(float(dropout_p) * 2.0 ** 32)), 2 ** 32 - 1)

    def kernel(seed_ref, x_ref, *rest):
        o_ref = rest[-1]
        wb_refs = rest[:-1]

        h = x_ref[...]
        for l in range(num_layers):
            w_ref = wb_refs[2 * l]
            b_ref = wb_refs[2 * l + 1]
            # MXU matmul with f32 accumulation; bias + ReLU on the VPU.
            h = jnp.dot(h.astype(mxu_dtype), w_ref[...],
                        preferred_element_type=jnp.float32)
            h = jnp.maximum(h + b_ref[...].astype(jnp.float32), 0.0)
            if apply_dropout:
                # Stateless counter-hash dropout mask, decorrelated across
                # layers, row tiles and seeds.  1/keep_prob is folded into the
                # next layer's weights by the wrapper, so the in-kernel mask
                # path is just hash + compare + select (no extra multiply).
                salt = jnp.uint32(((l + 1) * 0x85EBCA6B) & 0xFFFFFFFF)
                base = (seed_ref[0].astype(jnp.uint32) * jnp.uint32(0x9E3779B9)
                        ^ pl.program_id(0).astype(jnp.uint32) * jnp.uint32(0xC2B2AE35)
                        ^ salt)
                base = _hash_u32(base)
                row = jax.lax.broadcasted_iota(jnp.int32, h.shape, 0).astype(jnp.uint32)
                col = jax.lax.broadcasted_iota(jnp.int32, h.shape, 1).astype(jnp.uint32)
                ctr = row * jnp.uint32(h.shape[1]) + col
                bits = _hash_u32(ctr + base)
                keep = bits >= jnp.uint32(threshold)
                h = jnp.where(keep, h, 0.0)
        if apply_dropout and out_scale != 1.0:
            # 1/keep_prob for the *last* layer's dropout (cannot be folded
            # into a following weight matrix).
            h = h * jnp.float32(out_scale)
        o_ref[...] = h.astype(o_ref.dtype)

    return kernel


def prenet(x, weights, biases, *, dropout=0.5, deterministic=True, seed=0,
           tm=None, mxu_dtype=None):
    """PreNet forward.

    weights[l]: (d_in_l, d_out_l)  (transposed vs. PyTorch nn.Linear.weight)
    biases[l]:  (d_out_l,)
    Applies Linear -> ReLU -> Dropout per layer; dropout is active only when
    deterministic=False (matching nn.Dropout train/eval semantics).

    mxu_dtype: dtype of the matmul operands.  None keeps the input dtype
    (exact numerics vs. the reference); jnp.bfloat16 uses the native-bf16 MXU
    (2-3x matmul throughput, half the resident weight VMEM) with f32 accumulation.
    """
    assert len(weights) == len(biases) and len(weights) >= 1
    lead = x.shape[:-1]
    d_in = x.shape[-1]
    N = 1
    for s in lead:
        N *= s
    x2 = x.reshape(N, d_in)

    d_prev = d_in
    outs = []
    for w, b in zip(weights, biases):
        assert w.shape[0] == d_prev and b.shape == (w.shape[1],)
        d_prev = w.shape[1]
        outs.append(d_prev)
    d_out = d_prev
    num_layers = len(weights)

    if mxu_dtype is None:
        mxu_dtype = x.dtype
    mxu_dtype = jnp.dtype(mxu_dtype)

    apply_dropout = (not deterministic) and float(dropout) > 0.0
    inv_keep = 1.0 / (1.0 - float(dropout)) if float(dropout) < 1.0 else 0.0

    # Lane-dense padding: every layer's output width padded (zeros) to a
    # multiple of 128 so the final writeback is an unmasked `vst` and the
    # intermediate activations sit on full vregs.  Padded columns stay exactly
    # zero through bias / ReLU / dropout, so results are unchanged; the wrapper
    # slices them off afterwards.  (The input d_in is NOT padded: that would
    # only increase the streamed HBM bytes of x.)
    outs_pad = [_round_up(o, 128) for o in outs]
    ins_pad = [d_in] + outs_pad[:-1]
    d_out_pad = outs_pad[-1]

    w_ops, b_ops = [], []
    for l, (w, b) in enumerate(zip(weights, biases)):
        # Fold the 1/keep_prob of the *previous* layer's dropout into this
        # layer's weights (training mode only); the last layer's 1/keep_prob is
        # applied once at the output inside the kernel.
        scale = inv_keep if (apply_dropout and l > 0) else 1.0
        wp = jnp.zeros((ins_pad[l], outs_pad[l]), mxu_dtype)
        wp = wp.at[: w.shape[0], : w.shape[1]].set((w * scale).astype(mxu_dtype))
        bp = jnp.zeros((1, outs_pad[l]), jnp.float32)
        bp = bp.at[0, : b.shape[0]].set(b.astype(jnp.float32))
        w_ops.append(wp)
        b_ops.append(bp)

    # Row tile: big enough to amortize the ~0.35 us per-grid-step overhead and
    # approach the HBM roofline, but keeping >= 2 grid steps when there is
    # enough work so v7x's two TensorCores both get a share of the "parallel"
    # axis.
    if tm is None:
        tm = 1024
        if 512 <= N <= 2 * tm:
            tm = max(256, _round_up(pl.cdiv(N, 2), 256))
    tm = max(8, min(int(tm), _round_up(N, 8)))

    # Honest VMEM estimate: double-buffered x/out tiles + double-buffered
    # resident params + f32 intermediates (h, hash bits, mask temps).  Shrink
    # the tile if it would not fit a conservative budget (v7x has only 64 MiB
    # physical / 32 MiB default scoped VMEM).
    x_item = jnp.dtype(x.dtype).itemsize
    params_bytes = sum(wp.size * wp.dtype.itemsize + bp.size * bp.dtype.itemsize
                       for wp, bp in zip(w_ops, b_ops))
    max_width = max([d_in] + outs_pad)

    def vmem_estimate(tm_):
        est = 2 * tm_ * d_in * x_item          # double-buffered input tile
        est += 2 * tm_ * d_out_pad * x_item    # double-buffered output tile
        est += 2 * params_bytes                # double-buffered resident params
        est += 3 * tm_ * max_width * 4         # f32 h + hash bits + mask temps
        return est

    vmem_budget = 40 * 1024 * 1024
    while tm > 8 and vmem_estimate(tm) > vmem_budget:
        tm = max(8, _round_up(tm // 2, 8))
    vmem_limit = int(min(max(2 * vmem_estimate(tm), 16 * 1024 * 1024),
                         48 * 1024 * 1024))

    grid = (pl.cdiv(N, tm),)

    kernel = _make_prenet_kernel(num_layers, float(dropout), apply_dropout,
                                 mxu_dtype, inv_keep)

    # x row tile + VMEM-resident (constant index_map) weights/biases.  Resident
    # params only logically need one buffer; the default double-buffering costs
    # a few hundred KiB at these sizes, so we keep it for maximum portability.
    in_specs = [pl.BlockSpec((tm, d_in), lambda i, seed_ref: (i, 0))]
    operands = [x2]
    for wp, bp in zip(w_ops, b_ops):
        in_specs.append(pl.BlockSpec(wp.shape, lambda i, seed_ref: (0, 0)))
        in_specs.append(pl.BlockSpec(bp.shape, lambda i, seed_ref: (0, 0)))
        operands.append(wp)
        operands.append(bp)

    seed_arr = jnp.asarray([seed], dtype=jnp.int32)

    out = pl.pallas_call(
        kernel,
        out_shape=jax.ShapeDtypeStruct((N, d_out_pad), x.dtype),
        grid_spec=pltpu.PrefetchScalarGridSpec(
            num_scalar_prefetch=1,
            grid=grid,
            in_specs=in_specs,
            out_specs=pl.BlockSpec((tm, d_out_pad), lambda i, seed_ref: (i, 0)),
        ),
        compiler_params=pltpu.CompilerParams(
            dimension_semantics=("parallel",),
            vmem_limit_bytes=vmem_limit,
        ),
    )(seed_arr, *operands)

    if d_out_pad != d_out:
        out = out[:, :d_out]
    return out.reshape(*lead, d_out)


def prenet_ref(x, weights, biases):
    """Pure-JAX reference matching the PyTorch forward in eval mode
    (nn.Dropout is the identity when not training)."""
    h = x
    for w, b in zip(weights, biases):
        h = jnp.maximum(jnp.dot(h, w, precision=jax.lax.Precision.HIGHEST) + b, 0.0)
    return h


if __name__ == "__main__":
    key = jax.random.PRNGKey(0)
    B, S = 2, 8
    in_dim = 32
    layer_sizes = [64, 32]
    dropout_p = 0.5

    keys = jax.random.split(key, 2 * len(layer_sizes) + 1)
    x = jax.random.normal(keys[0], (B, S, in_dim), jnp.float32)

    # nn.Linear(in, out) default init; weights stored transposed: (in, out).
    sizes = [in_dim] + layer_sizes
    weights, biases = [], []
    for l, (din, dout) in enumerate(zip(sizes[:-1], sizes[1:])):
        bound = 1.0 / math.sqrt(din)
        w = jax.random.uniform(keys[1 + 2 * l], (din, dout), jnp.float32, -bound, bound)
        b = jax.random.uniform(keys[2 + 2 * l], (dout,), jnp.float32, -bound, bound)
        weights.append(w)
        biases.append(b)

    ref = prenet_ref(x, weights, biases)

    # Eval mode (deterministic): exact-dtype matmul path must match the reference.
    out = jax.block_until_ready(
        prenet(x, weights, biases, dropout=dropout_p, deterministic=True))
    assert out.shape == (B, S, layer_sizes[-1]) and out.dtype == x.dtype
    assert jnp.allclose(out, ref, atol=1e-4, rtol=1e-4), "eval mismatch vs reference"

    # Eval mode with bf16 MXU operands (perf option): looser tolerance.
    out_bf16 = jax.block_until_ready(
        prenet(x, weights, biases, dropout=dropout_p, deterministic=True,
               mxu_dtype=jnp.bfloat16))
    assert out_bf16.shape == out.shape and out_bf16.dtype == out.dtype
    assert jnp.allclose(out_bf16, ref, atol=5e-2, rtol=5e-2), "bf16-MXU mismatch vs reference"

    # Training mode: in-kernel counter-hash dropout (portable, deterministic per seed).
    out_d1 = jax.block_until_ready(
        prenet(x, weights, biases, dropout=dropout_p, deterministic=False, seed=1234))
    out_d2 = jax.block_until_ready(
        prenet(x, weights, biases, dropout=dropout_p, deterministic=False, seed=1234))
    assert out_d1.shape == out.shape and out_d1.dtype == out.dtype
    assert bool(jnp.all(jnp.isfinite(out_d1)))
    assert bool(jnp.array_equal(out_d1, out_d2)), "dropout must be deterministic per seed"

    print("KERNEL_OK")
</pallas_src>

<mosaic_0001>
module attributes {stable_mosaic.version = 11 : i64} {
  func.func @kernel(%arg0: i32, %arg1: memref<1xi32, #tpu.memory_space<smem>>, %arg2: memref<16x32xf32, #tpu.memory_space<vmem>>, %arg3: memref<32x128xf32, #tpu.memory_space<vmem>>, %arg4: memref<1x128xf32, #tpu.memory_space<vmem>>, %arg5: memref<128x128xf32, #tpu.memory_space<vmem>>, %arg6: memref<1x128xf32, #tpu.memory_space<vmem>>, %arg7: memref<16x128xf32, #tpu.memory_space<vmem>>) attributes {dimension_semantics = [#tpu.dimension_semantics<parallel>], iteration_bounds = array<i64: 1>, scalar_prefetch = 1 : i64, scratch_operands = 0 : i64, tpu.core_type = #tpu.core_type<tc>, window_params = [{transform_indices = @transform_0, window_bounds = array<i64: 16, 32>}, {pipeline_mode = #tpu.pipeline_mode<synchronous>, transform_indices = @transform_1, window_bounds = array<i64: 32, 128>}, {pipeline_mode = #tpu.pipeline_mode<synchronous>, transform_indices = @transform_2, window_bounds = array<i64: 1, 128>}, {pipeline_mode = #tpu.pipeline_mode<synchronous>, transform_indices = @transform_3, window_bounds = array<i64: 128, 128>}, {pipeline_mode = #tpu.pipeline_mode<synchronous>, transform_indices = @transform_4, window_bounds = array<i64: 1, 128>}, {transform_indices = @transform_5, window_bounds = array<i64: 16, 128>}]} {
    %c0 = arith.constant 0 : index
    %c0_0 = arith.constant 0 : index
    %0 = vector.load %arg2[%c0, %c0_0] : memref<16x32xf32, #tpu.memory_space<vmem>>, vector<16x32xf32>
    %c0_1 = arith.constant 0 : index
    %c0_2 = arith.constant 0 : index
    %1 = vector.load %arg3[%c0_1, %c0_2] : memref<32x128xf32, #tpu.memory_space<vmem>>, vector<32x128xf32>
    %cst = arith.constant dense<0.000000e+00> : vector<16x128xf32>
    %2 = tpu.matmul %0, %1, %cst {dimension_numbers = #tpu.dot_dimension_numbers<[1], [0], [0], [1], [0, 0, 1, 1], [], []>} : vector<16x32xf32>, vector<32x128xf32>, vector<16x128xf32> -> vector<16x128xf32>
    %c0_3 = arith.constant 0 : index
    %c0_4 = arith.constant 0 : index
    %3 = vector.load %arg4[%c0_3, %c0_4] : memref<1x128xf32, #tpu.memory_space<vmem>>, vector<1x128xf32>
    %4 = vector.broadcast %3 : vector<1x128xf32> to vector<16x128xf32>
    %5 = arith.addf %2, %4 : vector<16x128xf32>
    %cst_5 = arith.constant 0.000000e+00 : f32
    %6 = vector.broadcast %cst_5 : f32 to vector<16x128xf32>
    %7 = arith.maximumf %5, %6 : vector<16x128xf32>
    %c0_6 = arith.constant 0 : index
    %c0_7 = arith.constant 0 : index
    %8 = vector.load %arg5[%c0_6, %c0_7] : memref<128x128xf32, #tpu.memory_space<vmem>>, vector<128x128xf32>
    %cst_8 = arith.constant dense<0.000000e+00> : vector<16x128xf32>
    %9 = tpu.matmul %7, %8, %cst_8 {dimension_numbers = #tpu.dot_dimension_numbers<[1], [0], [0], [1], [0, 0, 1, 1], [], []>} : vector<16x128xf32>, vector<128x128xf32>, vector<16x128xf32> -> vector<16x128xf32>
    %c0_9 = arith.constant 0 : index
    %c0_10 = arith.constant 0 : index
    %10 = vector.load %arg6[%c0_9, %c0_10] : memref<1x128xf32, #tpu.memory_space<vmem>>, vector<1x128xf32>
    %11 = vector.broadcast %10 : vector<1x128xf32> to vector<16x128xf32>
    %12 = arith.addf %9, %11 : vector<16x128xf32>
    %cst_11 = arith.constant 0.000000e+00 : f32
    %13 = vector.broadcast %cst_11 : f32 to vector<16x128xf32>
    %14 = arith.maximumf %12, %13 : vector<16x128xf32>
    %c0_12 = arith.constant 0 : index
    %c0_13 = arith.constant 0 : index
    %15 = vector.load %arg7[%c0_12, %c0_13] : memref<16x128xf32, #tpu.memory_space<vmem>>, vector<16x128xf32>
    tpu.vector_store %arg7[%c0_12, %c0_13], %14 {strides = array<i32>} : memref<16x128xf32, #tpu.memory_space<vmem>>, vector<16x128xf32>,
    return
  }
  func.func @transform_0(%arg0: i32, %arg1: memref<1xi32, #tpu.memory_space<smem>>) -> (i32, i32) {
    %c0_i32 = arith.constant 0 : i32
    %c0_i32_0 = arith.constant 0 : i32
    return %arg0, %c0_i32 : i32, i32
  }
  func.func @transform_1(%arg0: i32, %arg1: memref<1xi32, #tpu.memory_space<smem>>) -> (i32, i32) {
    %c0_i32 = arith.constant 0 : i32
    %c0_i32_0 = arith.constant 0 : i32
    %c0_i32_1 = arith.constant 0 : i32
    return %c0_i32, %c0_i32_0 : i32, i32
  }
  func.func @transform_2(%arg0: i32, %arg1: memref<1xi32, #tpu.memory_space<smem>>) -> (i32, i32) {
    %c0_i32 = arith.constant 0 : i32
    %c0_i32_0 = arith.constant 0 : i32
    %c0_i32_1 = arith.constant 0 : i32
    return %c0_i32, %c0_i32_0 : i32, i32
  }
  func.func @transform_3(%arg0: i32, %arg1: memref<1xi32, #tpu.memory_space<smem>>) -> (i32, i32) {
    %c0_i32 = arith.constant 0 : i32
    %c0_i32_0 = arith.constant 0 : i32
    %c0_i32_1 = arith.constant 0 : i32
    return %c0_i32, %c0_i32_0 : i32, i32
  }
  func.func @transform_4(%arg0: i32, %arg1: memref<1xi32, #tpu.memory_space<smem>>) -> (i32, i32) {
    %c0_i32 = arith.constant 0 : i32
    %c0_i32_0 = arith.constant 0 : i32
    %c0_i32_1 = arith.constant 0 : i32
    return %c0_i32, %c0_i32_0 : i32, i32
  }
  func.func @transform_5(%arg0: i32, %arg1: memref<1xi32, #tpu.memory_space<smem>>) -> (i32, i32) {
    %c0_i32 = arith.constant 0 : i32
    %c0_i32_0 = arith.constant 0 : i32
    return %arg0, %c0_i32 : i32, i32
  }
}

</mosaic_0001>

<bundles_post_ra>
// kernel: tpu_custom_call.1
= control target key start
LH: loop header
LB: loop body
LE: loop exit
PB: predicated region body
PF: predicated region fallthrough
CT: control target
= control target key end

     0   :  { %12 = vsyncpa [#allocation5], 0  ;;  %s380_s0 = inlined_call_operand.<no memory space> [shape: s32[1], index: 0, kind: input, shape index: {}]   ;;  %s381_s1 = inlined_call_operand.hbm [shape: f32[16,32], index: 1, kind: input, shape index: {}]   ;;  %s382_s2 = inlined_call_operand.hbm [shape: f32[32,128], index: 2, kind: input, shape index: {}]   ;;  %s383_s3 = inlined_call_operand.vmem [shape: f32[1,128], index: 3, kind: input, shape index: {}]   ;;  %s384_s4 = inlined_call_operand.hbm [shape: f32[128,128], index: 4, kind: input, shape index: {}]   ;;  %s385_s5 = inlined_call_operand.vmem [shape: f32[1,128], index: 5, kind: input, shape index: {}]   ;;  %s386_s6 = inlined_call_operand.hbm [shape: f32[16,128], index: 6, kind: output, shape index: {}]  }
   0x1   :  { %13 = vsyncpa [#allocation8], 0 }
   0x2   :  { %14 = vsyncpa [#allocation6], 0  ;;  %s32_s22 = sshll.u32 %s382_s2, 4  ;;  %s307_s23 = smov [#allocation7]   ;;  %s33_s22 = int_to_ptr.hbm [resolvable:$true] %s32_s22 }
   0x3   :  { %s34_s24 = sshll.u32 %s307_s23, 4  ;;  %s19_s27 = sshll.u32 %s381_s1, 4  ;;  %s35_s24 = int_to_ptr.vmem [resolvable:$true] %s34_s24  ;;  %s20_s27 = int_to_ptr.hbm [resolvable:$true] %s19_s27 }
   0x4   :  { %s308_s28 = smov 128   ;;  %s309_s29 = smov 8  }
   0x5   :  { %40 = dma.hbm_to_vmem [thread:$0]  %s33_s22, 512, %s35_s24, [#allocation8], %s308_s28, %s308_s28, %s309_s29  }
   0x6   :  { %s310_s30 = smov [#allocation4]   ;;  %s47_s2 = sshll.u32 %s384_s4, 4  ;;  %s48_s2 = int_to_ptr.hbm [resolvable:$true] %s47_s2 }
   0x7   :  { %s21_s7 = sshll.u32 %s310_s30, 4  ;;  %s311_s1 = smov [#allocation9]   ;;  %s22_s7 = int_to_ptr.vmem [resolvable:$true] %s21_s7 }
   0x8   :  { %27 = dma.hbm_to_vmem [thread:$0]  %s20_s27, 256, %s22_s7, [#allocation5], %s308_s28, %s308_s28, %s309_s29  }
   0x9   :  { %s49_s10 = sshll.u32 %s311_s1, 4  ;;  %s50_s10 = int_to_ptr.vmem [resolvable:$true] %s49_s10 }
   0xa   :  { %55 = dma.hbm_to_vmem [thread:$0]  %s48_s2, 2048, %s50_s10, [#allocation8], %s308_s28, %s308_s28, %s309_s29  }
   0xb   :  { %301 = dma.done.wait [#allocation5], 256  }
   0xc   :  { %302 = vsyncadd [#allocation5], 4294967040 }
   0xd   :  { %303 = dma.done.wait [#allocation8], 2560  }
   0xe   :  { %304 = vsyncadd [#allocation8], 4294964736  ;;  %v75_v0 = vld [vmem:[#allocation7 + $0x18] sm:$0xff]  ;;  %v74_v1 = vld [vmem:[#allocation7 + $0x10] sm:$0xff]  ;;  %vm80_vm0 = vcmask 261120   ;;  %s312_s14 = smov [#allocation10]  }
   0xf   :  { %99 = vmatpush.msra.mxu0 %v75_v0  ;;  %v73_v2 = vld [vmem:[#allocation7 + $0x8] sm:$0xff]  ;;  %v127_v3 = vld [vmem:[#allocation9 + $0x78] sm:$0xff]  ;;  %v126_v4 = vld [vmem:[#allocation9 + $0x70] sm:$0xff]  ;;  %s163_s15 = sshll.u32 %s312_s14, 4  ;;  %s165_s17 = sshll.u32 %s386_s6, 4  ;;  %s164_s15 = int_to_ptr.vmem [resolvable:$true] %s163_s15  ;;  %s166_s17 = int_to_ptr.hbm [resolvable:$true] %s165_s17 }
  0x10   :  { %132 = vmatpush.msra.mxu1 %v127_v3  ;;  %v72_v5 = vld [vmem:[#allocation7] sm:$0xff]  ;;  %v125_v6 = vld [vmem:[#allocation9 + $0x68] sm:$0xff]  ;;  %181 = vmatpush.msra.mxu2 %v127_v3  ;;  %v70_v7 = vld [vmem:[#allocation4] sm:$0xff] }
  0x11   :  { %100 = vmatpush.msra.mxu0 %v74_v1  ;;  %v124_v8 = vld [vmem:[#allocation9 + $0x60] sm:$0xff]  ;;  %v123_v9 = vld [vmem:[#allocation9 + $0x58] sm:$0xff]  ;;  %v122_v10 = vld [vmem:[#allocation9 + $0x50] sm:$0xff] }
  0x12   :  { %133 = vmatpush.msra.mxu1 %v126_v4  ;;  %182 = vmatpush.msra.mxu2 %v126_v4  ;;  %v121_v11 = vld [vmem:[#allocation9 + $0x48] sm:$0xff]  ;;  %v71_v12 = vld [vmem:[#allocation4 + $0x8] sm:$0xff]  ;;  %v120_v13 = vld [vmem:[#allocation9 + $0x40] sm:$0xff] }
  0x13   :  { %101 = vmatpush.msra.mxu0 %v73_v2  ;;  %v119_v14 = vld [vmem:[#allocation9 + $0x38] sm:$0xff]  ;;  %v118_v15 = vld [vmem:[#allocation9 + $0x30] sm:$0xff]  ;;  %v117_v16 = vld [vmem:[#allocation9 + $0x28] sm:$0xff] }
  0x14   :  { %134 = vmatpush.msra.mxu1 %v125_v6  ;;  %183 = vmatpush.msra.mxu2 %v125_v6  ;;  %v116_v17 = vld [vmem:[#allocation9 + $0x20] sm:$0xff]  ;;  %v115_v18 = vld [vmem:[#allocation9 + $0x18] sm:$0xff]  ;;  %v114_v19 = vld [vmem:[#allocation9 + $0x10] sm:$0xff] }
  0x15   :  { %102 = vmatpush.msra.mxu0 %v72_v5  ;;  %v113_v20 = vld [vmem:[#allocation9 + $0x8] sm:$0xff]  ;;  %v112_v21 = vld [vmem:[#allocation9] sm:$0xff]  ;;  %v203_v22 = vld [vmem:[%s383_s3] ss:$0 sm:$0xff] }
  0x16   :  { %179 = vmatmul.msk.f32.vlgmr.msra.gmra.mxu0 %vm80_vm0, %v70_v7  ;;  %135 = vmatpush.msra.mxu1 %v124_v8  ;;  %v204_v29 = vld [vmem:[%s385_s5] ss:$0 sm:$0xff] }
  0x17   :  { %184 = vmatpush.msra.mxu2 %v124_v8 }
  0x18   :  { %136 = vmatpush.msra.mxu1 %v123_v9 }
  0x19   :  { %185 = vmatpush.msra.mxu2 %v123_v9 }
  0x1a   :  { %137 = vmatpush.msra.mxu1 %v122_v10 }
  0x1b   :  { %186 = vmatpush.msra.mxu2 %v122_v10 }
  0x1c   :  { %138 = vmatpush.msra.mxu1 %v121_v11 }
  0x1d   :  { %187 = vmatpush.msra.mxu2 %v121_v11 }
  0x1e   :  { %180 = vmatmul.msk.f32.gmra.mxu0 %vm80_vm0, %v71_v12  ;;  %139 = vmatpush.msra.mxu1 %v120_v13 }
  0x1f   :  { %188 = vmatpush.msra.mxu2 %v120_v13 }
  0x20   :  { %140 = vmatpush.msra.mxu1 %v119_v14 }
  0x21   :  { %189 = vmatpush.msra.mxu2 %v119_v14 }
  0x22   :  { %141 = vmatpush.msra.mxu1 %v118_v15 }
  0x23   :  { %190 = vmatpush.msra.mxu2 %v118_v15 }
  0x24   :  { %142 = vmatpush.msra.mxu1 %v117_v16 }
  0x25   :  { %191 = vmatpush.msra.mxu2 %v117_v16 }
  0x26   :  { %143 = vmatpush.msra.mxu1 %v116_v17 }
  0x27   :  { %192 = vmatpush.msra.mxu2 %v116_v17 }
  0x28   :  { %144 = vmatpush.msra.mxu1 %v115_v18 }
  0x29   :  { %193 = vmatpush.msra.mxu2 %v115_v18 }
  0x2a   :  { %145 = vmatpush.msra.mxu1 %v114_v19 }
  0x2b   :  { %194 = vmatpush.msra.mxu2 %v114_v19 }
  0x2c   :  { %146 = vmatpush.msra.mxu1 %v113_v20 }
  0x2d   :  { %195 = vmatpush.msra.mxu2 %v113_v20 }
  0x2e   :  { %147 = vmatpush.msra.mxu1 %v112_v21 }
  0x2f   :  { %196 = vmatpush.msra.mxu2 %v112_v21 }
  0x93   :  { %v104_v23 = vpop.f32.mrf.mxu0 }
  0x94   :  { %v105_v24 = vadd.f32 %v203_v22, %v104_v23 }
  0x96   :  { %v110_v25 = vmax.f32 %v105_v24, 0.0 }
  0x98   :  { %148 = vmatmul.f32.vlgmr.msra.gmra.mxu1 %v110_v25 }
  0x9b   :  { %v107_v26 = vpop.f32.mrf.mxu0 }
  0x9c   :  { %v108_v27 = vadd.f32 %v203_v22, %v107_v26 }
  0x9e   :  { %v111_v28 = vmax.f32 %v108_v27, 0.0 }
  0xa0   :  { %151 = vmatmul.f32.vlgmr.msra.gmra.mxu2 %v111_v28 }
 0x115   :  { %v149_v30 = vpop.f32.mrf.mxu1 }
 0x116   :  { %v150_v31 = vadd.f32 %v204_v29, %v149_v30 }
 0x118   :  { %v155_v32 = vmax.f32 %v150_v31, 0.0 }
 0x11a   :  { %157 = vst [vmem:[#allocation10] sm:$0xff] %v155_v32 }
 0x123   :  { %v152_v33 = vpop.f32.mrf.mxu2 }
 0x124   :  { %v153_v34 = vadd.f32 %v204_v29, %v152_v33 }
 0x126   :  { %v156_v35 = vmax.f32 %v153_v34, 0.0 }
 0x128   :  { %158 = vst [vmem:[#allocation10 + $0x8] sm:$0xff] %v156_v35 }
 0x129   :  { %171 = dma.vmem_to_hbm [thread:$0]  %s164_s15, 256, %s166_s17, [#allocation6], %s308_s28, %s308_s28, %s309_s29  }
 0x12a   :  { %305 = dma.done.wait [#allocation6], 256  }
 0x12b   :  { %306 = vsyncadd [#allocation6], 4294967040 }
 0x12c   :  { %176 = vsyncpa [#allocation5], 1 }
 0x12d   :  { %177 = vsyncpa [#allocation8], 1 }
 0x12e   :  { %178 = vsyncpa [#allocation6], 1 }

</bundles_post_ra>
